<compile_context>
chip_gen: v7x
topology: tpu7x:2x2x1
jax: 0.10.0
libtpu: 0.0.40
codegen_flags: <defaults>
</compile_context>

<pallas_src>
import functools

import jax
import jax.numpy as jnp
import numpy as np
from jax.experimental import pallas as pl
from jax.experimental.pallas import tpu as pltpu

D_PAD = 128     # uniform padded feature/lane width (all layer widths <= 128)
COL_ALIGN = 16  # state/action column alignment (matches bf16 (16,128) tiling)


def _round_up(x, m):
    return ((x + m - 1) // m) * m


# ----------------------------------------------------------------------------
# Pallas kernel: one batch tile of the whole MLP.
# ----------------------------------------------------------------------------
def _fcnet_inject_kernel(num_hidden, layer_x, D, st_ref, ac_ref, wp_ref,
                         bp_ref, o_ref):
    """st_ref: (TB, in_pad)   f32  state  (zero-padded columns)
       ac_ref: (TB, x_pad)    f32  action (zero-padded columns)
       wp_ref: (n_wblk*D, D)  bf16 packed zero-padded weights (one block/matmul)
       bp_ref: (n_bias_pad,D) f32  packed zero-padded biases (one row/layer)
       o_ref : (TB, D)        f32  lane-dense output slab."""

    def mm(x_bf16, w_idx, rows=D):
        w = wp_ref[w_idx * D: w_idx * D + rows, :]          # (rows, D) bf16
        return jnp.dot(x_bf16, w, preferred_element_type=jnp.float32)

    def bias(b_idx):
        return bp_ref[b_idx:b_idx + 1, :]                   # (1, D) f32

    # input layer + ReLU (K = padded state width; extra rows/cols are zero)
    st_bf = st_ref[...].astype(jnp.bfloat16)
    x = jnp.maximum(mm(st_bf, 0, st_ref.shape[1]) + bias(0), 0.0)

    w_idx = 1
    for i in range(num_hidden):
        pre = mm(x.astype(jnp.bfloat16), w_idx) + bias(1 + i)
        w_idx += 1
        if i == layer_x:
            # fused action injection: cat(x, a) @ W == x @ W_main + a @ W_inj
            ac_bf = ac_ref[...].astype(jnp.bfloat16)
            pre = pre + mm(ac_bf, w_idx, ac_ref.shape[1])
            w_idx += 1
        x = jnp.maximum(pre, 0.0)

    # output layer (output_func is identity / _dummy_func); lane-dense store,
    # real outputs live in the first `output_size` columns.
    o_ref[...] = mm(x.astype(jnp.bfloat16), w_idx) + bias(1 + num_hidden)


# ----------------------------------------------------------------------------
# Parameter construction (deterministic, mirrors _init_fc_net semantics).
# Weights stored transposed as (in, out) so the kernel computes x @ W + b.
# ----------------------------------------------------------------------------
def build_params(input_size, output_size, hidden_sizes, layer_x, size_x, key):
    keys = list(jax.random.split(key, 64))
    kit = iter(keys)

    def unif(shape, lim):
        return jax.random.uniform(next(kit), shape, jnp.float32, -lim, lim)

    params = []
    # input layer: _hidden_init uses weight.size(0) == out_features as fan_in;
    # bias keeps PyTorch's default uniform(-1/sqrt(in_features), ...).
    lim = 1.0 / np.sqrt(hidden_sizes[0])
    params.append(unif((input_size, hidden_sizes[0]), lim))               # W
    params.append(unif((1, hidden_sizes[0]), 1.0 / np.sqrt(input_size)))  # b

    for i in range(len(hidden_sizes) - 1):
        h0, h1 = hidden_sizes[i], hidden_sizes[i + 1]
        lim = 1.0 / np.sqrt(h1)
        if i == layer_x:
            params.append(unif((h0, h1), lim))       # main part of weight
            params.append(unif((size_x, h1), lim))   # inject (action) part
            fan_in_b = h0 + size_x
        else:
            params.append(unif((h0, h1), lim))
            fan_in_b = h0
        params.append(unif((1, h1), 1.0 / np.sqrt(fan_in_b)))

    params.append(unif((hidden_sizes[-1], output_size), 0.003))
    params.append(unif((1, output_size), 1.0 / np.sqrt(hidden_sizes[-1])))
    return params


# ----------------------------------------------------------------------------
# Pack all params into one bf16 weight slab + one f32 bias slab (2 operands).
# ----------------------------------------------------------------------------
def pack_params(params, input_size, size_x, output_size, hidden_sizes,
                layer_x, D=D_PAD):
    num_hidden = len(hidden_sizes) - 1
    assert max(hidden_sizes) <= D and output_size <= D
    assert input_size <= D and size_x <= D

    has_inject = 0 <= layer_x < num_hidden
    n_wblocks = 2 + num_hidden + (1 if has_inject else 0)
    n_bias = 2 + num_hidden

    wp = np.zeros((n_wblocks * D, D), np.float32)
    bp = np.zeros((_round_up(n_bias, 8), D), np.float32)

    p = [np.asarray(t) for t in params]
    idx, wblk, bidx = 0, 0, 0

    def put_w(w):
        nonlocal wblk
        wp[wblk * D: wblk * D + w.shape[0], :w.shape[1]] = w
        wblk += 1

    def put_b(b):
        nonlocal bidx
        bp[bidx, :b.shape[1]] = b[0]
        bidx += 1

    # input layer
    put_w(p[idx]); put_b(p[idx + 1]); idx += 2

    # hidden layers
    for i in range(num_hidden):
        if i == layer_x:
            put_w(p[idx])          # main part (rows 0..h0)
            put_w(p[idx + 1])      # inject part (rows 0..size_x of own block)
            put_b(p[idx + 2]); idx += 3
        else:
            put_w(p[idx]); put_b(p[idx + 1]); idx += 2

    # output layer
    put_w(p[idx]); put_b(p[idx + 1])

    return jnp.asarray(wp, jnp.bfloat16), jnp.asarray(bp, jnp.float32)


# ----------------------------------------------------------------------------
# Wrapper: batch-tiled pallas_call with VMEM-resident packed params.
# ----------------------------------------------------------------------------
def fcnet_inject_forward(state, action, wp, bp, hidden_sizes, layer_x,
                         output_size, *, tile_batch=None):
    num_hidden = len(hidden_sizes) - 1
    batch, input_size = state.shape
    size_x = action.shape[1]
    D = wp.shape[1]
    assert input_size <= D and size_x <= D

    in_pad = _round_up(input_size, COL_ALIGN)
    x_pad = _round_up(size_x, COL_ALIGN)

    # batch tile: multiple of 8 (f32 sublanes); large tiles amortize the
    # ~0.35us per-grid-step overhead and fill the MXU's M dimension.
    TB = tile_batch if tile_batch is not None else min(512, _round_up(batch, 8))
    batch_pad = _round_up(batch, TB)

    st = state
    if (batch_pad, in_pad) != tuple(state.shape):
        st = jnp.zeros((batch_pad, in_pad), state.dtype)
        st = st.at[:batch, :input_size].set(state)
    ac = action
    if (batch_pad, x_pad) != tuple(action.shape):
        ac = jnp.zeros((batch_pad, x_pad), action.dtype)
        ac = ac.at[:batch, :size_x].set(action)

    kernel = functools.partial(_fcnet_inject_kernel, num_hidden, layer_x, D)

    out = pl.pallas_call(
        kernel,
        out_shape=jax.ShapeDtypeStruct((batch_pad, D), jnp.float32),
        grid=(batch_pad // TB,),
        in_specs=[
            pl.BlockSpec((TB, in_pad), lambda i: (i, 0)),   # streamed state
            pl.BlockSpec((TB, x_pad), lambda i: (i, 0)),    # streamed action
            pl.BlockSpec(wp.shape, lambda i: (0, 0)),       # resident weights
            pl.BlockSpec(bp.shape, lambda i: (0, 0)),       # resident biases
        ],
        out_specs=pl.BlockSpec((TB, D), lambda i: (i, 0)),
        compiler_params=pltpu.CompilerParams(
            dimension_semantics=("parallel",),              # megacore on v7x
            vmem_limit_bytes=32 * 1024 * 1024,
        ),
    )(st, ac, wp, bp)
    return out[:batch, :output_size]


# ----------------------------------------------------------------------------
# References.
# ----------------------------------------------------------------------------
def fcnet_reference_packed(state, action, wp, bp, hidden_sizes, layer_x,
                           output_size):
    """Same bf16/f32 math as the kernel, pure JAX, on the packed buffers."""
    D = wp.shape[1]
    num_hidden = len(hidden_sizes) - 1

    def mm(x_bf, wi, rows=D):
        return jnp.dot(x_bf, wp[wi * D: wi * D + rows, :],
                       preferred_element_type=jnp.float32)

    def bias(i):
        return bp[i:i + 1, :]

    st_bf = state.astype(jnp.bfloat16)
    x = jnp.maximum(mm(st_bf, 0, state.shape[1]) + bias(0), 0.0)
    w_idx = 1
    for i in range(num_hidden):
        pre = mm(x.astype(jnp.bfloat16), w_idx) + bias(1 + i)
        w_idx += 1
        if i == layer_x:
            pre = pre + mm(action.astype(jnp.bfloat16), w_idx, action.shape[1])
            w_idx += 1
        x = jnp.maximum(pre, 0.0)
    out = mm(x.astype(jnp.bfloat16), w_idx) + bias(1 + num_hidden)
    return out[:, :output_size]


def fcnet_reference_f32(state, action, params, hidden_sizes, layer_x):
    """Original-module semantics (explicit concat), full f32 precision."""
    hi = jax.lax.Precision.HIGHEST
    num_hidden = len(hidden_sizes) - 1
    idx = 0
    w_in, b_in = params[idx], params[idx + 1]; idx += 2
    x = jnp.maximum(jnp.dot(state, w_in, precision=hi) + b_in, 0.0)
    for i in range(num_hidden):
        if i == layer_x:
            w_m, w_x, b = params[idx], params[idx + 1], params[idx + 2]; idx += 3
            w_cat = jnp.concatenate([w_m, w_x], axis=0)
            x_cat = jnp.concatenate([x, action], axis=1)
            x = jnp.maximum(jnp.dot(x_cat, w_cat, precision=hi) + b, 0.0)
        else:
            w, b = params[idx], params[idx + 1]; idx += 2
            x = jnp.maximum(jnp.dot(x, w, precision=hi) + b, 0.0)
    w_out, b_out = params[idx], params[idx + 1]
    return jnp.dot(x, w_out, precision=hi) + b_out


if __name__ == "__main__":
    # FCNetInjectX(input_size=16, output_size=4, hidden_sizes=[32, 64, 32],
    #              layer_x=1, size_x=8, random_seed=0)
    input_size = 16
    output_size = 4
    hidden_sizes = [32, 64, 32]
    layer_x = 1
    size_x = 8
    batch = 8
    num_hidden = len(hidden_sizes) - 1

    key = jax.random.PRNGKey(0)
    k_state, k_action, k_params = jax.random.split(key, 3)

    state = jax.random.normal(k_state, (batch, input_size), jnp.float32)
    action = jax.random.normal(k_action, (batch, size_x), jnp.float32)
    params = build_params(input_size, output_size, hidden_sizes,
                          layer_x, size_x, k_params)
    wp, bp = pack_params(params, input_size, size_x, output_size,
                         hidden_sizes, layer_x)

    out = fcnet_inject_forward(state, action, wp, bp, hidden_sizes,
                               layer_x, output_size)
    out = jax.block_until_ready(out)
    assert out.shape == (batch, output_size)

    # 1) tight check against a pure-JAX reference with identical bf16/f32 math
    ref_p = jax.block_until_ready(
        fcnet_reference_packed(state, action, wp, bp, hidden_sizes,
                               layer_x, output_size))
    np.testing.assert_allclose(np.asarray(out), np.asarray(ref_p),
                               rtol=1e-4, atol=1e-4)

    # 2) loose check against the original full-f32 concat semantics
    #    (difference is bf16 weight/activation quantization only)
    ref_f = jax.block_until_ready(
        fcnet_reference_f32(state, action, params, hidden_sizes, layer_x))
    np.testing.assert_allclose(np.asarray(out), np.asarray(ref_f),
                               rtol=5e-2, atol=5e-2)

    print("KERNEL_OK")
</pallas_src>

<mosaic_0001>
module attributes {stable_mosaic.version = 11 : i64} {
  func.func @_fcnet_inject_kernel(%arg0: i32, %arg1: memref<8x16xf32, #tpu.memory_space<vmem>>, %arg2: memref<8x16xf32, #tpu.memory_space<vmem>>, %arg3: memref<640x128xbf16, #tpu.memory_space<vmem>>, %arg4: memref<8x128xf32, #tpu.memory_space<vmem>>, %arg5: memref<8x128xf32, #tpu.memory_space<vmem>>) attributes {dimension_semantics = [#tpu.dimension_semantics<parallel>], iteration_bounds = array<i64: 1>, scalar_prefetch = 0 : i64, scratch_operands = 0 : i64, tpu.core_type = #tpu.core_type<tc>, window_params = [{transform_indices = @transform_0, window_bounds = array<i64: 8, 16>}, {transform_indices = @transform_1, window_bounds = array<i64: 8, 16>}, {pipeline_mode = #tpu.pipeline_mode<synchronous>, transform_indices = @transform_2, window_bounds = array<i64: 640, 128>}, {pipeline_mode = #tpu.pipeline_mode<synchronous>, transform_indices = @transform_3, window_bounds = array<i64: 8, 128>}, {transform_indices = @transform_4, window_bounds = array<i64: 8, 128>}]} {
    %c0 = arith.constant 0 : index
    %c0_0 = arith.constant 0 : index
    %0 = vector.load %arg1[%c0, %c0_0] : memref<8x16xf32, #tpu.memory_space<vmem>>, vector<8x16xf32>
    %1 = arith.truncf %0 : vector<8x16xf32> to vector<8x16xbf16>
    %c0_1 = arith.constant 0 : index
    %c0_2 = arith.constant 0 : index
    %2 = vector.load %arg3[%c0_1, %c0_2] : memref<640x128xbf16, #tpu.memory_space<vmem>>, vector<16x128xbf16>
    %cst = arith.constant dense<0.000000e+00> : vector<8x128xf32>
    %3 = tpu.matmul %1, %2, %cst {dimension_numbers = #tpu.dot_dimension_numbers<[1], [0], [0], [1], [0, 0, 1, 1], [], []>} : vector<8x16xbf16>, vector<16x128xbf16>, vector<8x128xf32> -> vector<8x128xf32>
    %c0_3 = arith.constant 0 : index
    %c0_4 = arith.constant 0 : index
    %4 = vector.load %arg4[%c0_3, %c0_4] : memref<8x128xf32, #tpu.memory_space<vmem>>, vector<1x128xf32>
    %5 = vector.broadcast %4 : vector<1x128xf32> to vector<8x128xf32>
    %6 = arith.addf %3, %5 : vector<8x128xf32>
    %cst_5 = arith.constant 0.000000e+00 : f32
    %7 = vector.broadcast %cst_5 : f32 to vector<8x128xf32>
    %8 = arith.maximumf %6, %7 : vector<8x128xf32>
    %9 = arith.truncf %8 : vector<8x128xf32> to vector<8x128xbf16>
    %c128 = arith.constant 128 : index
    %c0_6 = arith.constant 0 : index
    %10 = vector.load %arg3[%c128, %c0_6] : memref<640x128xbf16, #tpu.memory_space<vmem>>, vector<128x128xbf16>
    %cst_7 = arith.constant dense<0.000000e+00> : vector<8x128xf32>
    %11 = tpu.matmul %9, %10, %cst_7 {dimension_numbers = #tpu.dot_dimension_numbers<[1], [0], [0], [1], [0, 0, 1, 1], [], []>} : vector<8x128xbf16>, vector<128x128xbf16>, vector<8x128xf32> -> vector<8x128xf32>
    %c1 = arith.constant 1 : index
    %c0_8 = arith.constant 0 : index
    %12 = vector.load %arg4[%c1, %c0_8] : memref<8x128xf32, #tpu.memory_space<vmem>>, vector<1x128xf32>
    %13 = vector.broadcast %12 : vector<1x128xf32> to vector<8x128xf32>
    %14 = arith.addf %11, %13 : vector<8x128xf32>
    %cst_9 = arith.constant 0.000000e+00 : f32
    %15 = vector.broadcast %cst_9 : f32 to vector<8x128xf32>
    %16 = arith.maximumf %14, %15 : vector<8x128xf32>
    %17 = arith.truncf %16 : vector<8x128xf32> to vector<8x128xbf16>
    %c256 = arith.constant 256 : index
    %c0_10 = arith.constant 0 : index
    %18 = vector.load %arg3[%c256, %c0_10] : memref<640x128xbf16, #tpu.memory_space<vmem>>, vector<128x128xbf16>
    %cst_11 = arith.constant dense<0.000000e+00> : vector<8x128xf32>
    %19 = tpu.matmul %17, %18, %cst_11 {dimension_numbers = #tpu.dot_dimension_numbers<[1], [0], [0], [1], [0, 0, 1, 1], [], []>} : vector<8x128xbf16>, vector<128x128xbf16>, vector<8x128xf32> -> vector<8x128xf32>
    %c2 = arith.constant 2 : index
    %c0_12 = arith.constant 0 : index
    %20 = vector.load %arg4[%c2, %c0_12] : memref<8x128xf32, #tpu.memory_space<vmem>>, vector<1x128xf32>
    %21 = vector.broadcast %20 : vector<1x128xf32> to vector<8x128xf32>
    %22 = arith.addf %19, %21 : vector<8x128xf32>
    %c0_13 = arith.constant 0 : index
    %c0_14 = arith.constant 0 : index
    %23 = vector.load %arg2[%c0_13, %c0_14] : memref<8x16xf32, #tpu.memory_space<vmem>>, vector<8x16xf32>
    %24 = arith.truncf %23 : vector<8x16xf32> to vector<8x16xbf16>
    %c384 = arith.constant 384 : index
    %c0_15 = arith.constant 0 : index
    %25 = vector.load %arg3[%c384, %c0_15] : memref<640x128xbf16, #tpu.memory_space<vmem>>, vector<16x128xbf16>
    %cst_16 = arith.constant dense<0.000000e+00> : vector<8x128xf32>
    %26 = tpu.matmul %24, %25, %cst_16 {dimension_numbers = #tpu.dot_dimension_numbers<[1], [0], [0], [1], [0, 0, 1, 1], [], []>} : vector<8x16xbf16>, vector<16x128xbf16>, vector<8x128xf32> -> vector<8x128xf32>
    %27 = arith.addf %22, %26 : vector<8x128xf32>
    %cst_17 = arith.constant 0.000000e+00 : f32
    %28 = vector.broadcast %cst_17 : f32 to vector<8x128xf32>
    %29 = arith.maximumf %27, %28 : vector<8x128xf32>
    %30 = arith.truncf %29 : vector<8x128xf32> to vector<8x128xbf16>
    %c512 = arith.constant 512 : index
    %c0_18 = arith.constant 0 : index
    %31 = vector.load %arg3[%c512, %c0_18] : memref<640x128xbf16, #tpu.memory_space<vmem>>, vector<128x128xbf16>
    %cst_19 = arith.constant dense<0.000000e+00> : vector<8x128xf32>
    %32 = tpu.matmul %30, %31, %cst_19 {dimension_numbers = #tpu.dot_dimension_numbers<[1], [0], [0], [1], [0, 0, 1, 1], [], []>} : vector<8x128xbf16>, vector<128x128xbf16>, vector<8x128xf32> -> vector<8x128xf32>
    %c3 = arith.constant 3 : index
    %c0_20 = arith.constant 0 : index
    %33 = vector.load %arg4[%c3, %c0_20] : memref<8x128xf32, #tpu.memory_space<vmem>>, vector<1x128xf32>
    %34 = vector.broadcast %33 : vector<1x128xf32> to vector<8x128xf32>
    %35 = arith.addf %32, %34 : vector<8x128xf32>
    %c0_21 = arith.constant 0 : index
    %c0_22 = arith.constant 0 : index
    %36 = vector.load %arg5[%c0_21, %c0_22] : memref<8x128xf32, #tpu.memory_space<vmem>>, vector<8x128xf32>
    tpu.vector_store %arg5[%c0_21, %c0_22], %35 {strides = array<i32>} : memref<8x128xf32, #tpu.memory_space<vmem>>, vector<8x128xf32>,
    return
  }
  func.func @transform_0(%arg0: i32) -> (i32, i32) {
    %c0_i32 = arith.constant 0 : i32
    %c0_i32_0 = arith.constant 0 : i32
    return %arg0, %c0_i32 : i32, i32
  }
  func.func @transform_1(%arg0: i32) -> (i32, i32) {
    %c0_i32 = arith.constant 0 : i32
    %c0_i32_0 = arith.constant 0 : i32
    return %arg0, %c0_i32 : i32, i32
  }
  func.func @transform_2(%arg0: i32) -> (i32, i32) {
    %c0_i32 = arith.constant 0 : i32
    %c0_i32_0 = arith.constant 0 : i32
    %c0_i32_1 = arith.constant 0 : i32
    return %c0_i32, %c0_i32_0 : i32, i32
  }
  func.func @transform_3(%arg0: i32) -> (i32, i32) {
    %c0_i32 = arith.constant 0 : i32
    %c0_i32_0 = arith.constant 0 : i32
    %c0_i32_1 = arith.constant 0 : i32
    return %c0_i32, %c0_i32_0 : i32, i32
  }
  func.func @transform_4(%arg0: i32) -> (i32, i32) {
    %c0_i32 = arith.constant 0 : i32
    %c0_i32_0 = arith.constant 0 : i32
    return %arg0, %c0_i32 : i32, i32
  }
}

</mosaic_0001>

<bundles_post_ra>
// kernel: tpu_custom_call.1
= control target key start
LH: loop header
LB: loop body
LE: loop exit
PB: predicated region body
PF: predicated region fallthrough
CT: control target
= control target key end

     0   :  { %9 = vsyncpa [#allocation3], 0  ;;  %s918_s0 = inlined_call_operand.hbm [shape: f32[8,16], index: 0, kind: input, shape index: {}]   ;;  %s919_s1 = inlined_call_operand.hbm [shape: f32[8,16], index: 1, kind: input, shape index: {}]   ;;  %s920_s2 = inlined_call_operand.hbm [shape: bf16[640,128], index: 2, kind: input, shape index: {}]   ;;  %s921_s3 = inlined_call_operand.vmem [shape: f32[8,128], index: 3, kind: input, shape index: {}]   ;;  %s922_s4 = inlined_call_operand.hbm [shape: f32[8,128], index: 4, kind: output, shape index: {}]  }
   0x1   :  { %10 = vsyncpa [#allocation6], 0 }
   0x2   :  { %11 = vsyncpa [#allocation4], 0  ;;  %s787_s15 = smov [#allocation5]   ;;  %s788_s17 = smov [#allocation2]  }
   0x3   :  { %s28_s16 = sshll.u32 %s787_s15, 4  ;;  %s18_s18 = sshll.u32 %s788_s17, 4  ;;  %s29_s16 = int_to_ptr.vmem [resolvable:$true] %s28_s16  ;;  %s19_s18 = int_to_ptr.vmem [resolvable:$true] %s18_s18 }
   0x4   :  { %s693_s21 = scalar_lea.hbm %s919_s1, 128 }
   0x5   :  { %p694_p0 = scmp.ne.s32.totalorder %s919_s1, %s693_s21  ;;  %p697_p1 = scmp.lt.u32.totalorder %s693_s21, %s919_s1 }
   0x7   :  { %p699_p2 = pnand %p697_p1, %p694_p0 }
   0x9   :  { %702 = shalt.err (!%p699_p2)
}
   0xa   :  { %s703_s26 = scalar_lea.vmem %s29_s16, 128  ;;  %p708_p4 = scmp.lt.s32.totalorder %s29_s16, %s29_s16 }
   0xb   :  { %p704_p3 = scmp.ne.s32.totalorder %s29_s16, %s703_s26  ;;  %p709_p5 = scmp.lt.s32.totalorder %s703_s26, %s703_s26 }
   0xd   :  { %p710_p6 = por %p709_p5, %p708_p4 }
   0xf   :  { %p711_p7 = pnand %p710_p6, %p704_p3 }
  0x11   :  { %714 = shalt.err (!%p711_p7)
}
  0x12   :  { %31 = dma.hbm_to_vmem [thread:$0]  %s919_s1, 128, %s29_s16, [#allocation6]  }
  0x13   :  { %s715_s5 = scalar_lea.hbm %s918_s0, 128 }
  0x14   :  { %p716_p8 = scmp.ne.s32.totalorder %s918_s0, %s715_s5  ;;  %p719_p9 = scmp.lt.u32.totalorder %s715_s5, %s918_s0 }
  0x16   :  { %p721_p10 = pnand %p719_p9, %p716_p8 }
  0x18   :  { %724 = shalt.err (!%p721_p10)
}
  0x19   :  { %s725_s10 = scalar_lea.vmem %s19_s18, 128  ;;  %p730_p12 = scmp.lt.s32.totalorder %s19_s18, %s19_s18 }
  0x1a   :  { %p726_p11 = scmp.ne.s32.totalorder %s19_s18, %s725_s10  ;;  %p731_p13 = scmp.lt.s32.totalorder %s725_s10, %s725_s10 }
  0x1c   :  { %p732_p0 = por %p731_p13, %p730_p12 }
  0x1e   :  { %p733_p1 = pnand %p732_p0, %p726_p11 }
  0x20   :  { %736 = shalt.err (!%p733_p1)
}
  0x21   :  { %21 = dma.hbm_to_vmem [thread:$0]  %s918_s0, 128, %s19_s18, [#allocation3]  }
  0x22   :  { %s789_s12 = smov [#allocation7]   ;;  %s737_s16 = scalar_lea.hbm %s920_s2, 5120 }
  0x23   :  { %s37_s13 = sshll.u32 %s789_s12, 4  ;;  %p738_p2 = scmp.ne.s32.totalorder %s920_s2, %s737_s16  ;;  %s38_s13 = int_to_ptr.vmem [resolvable:$true] %s37_s13 }
  0x24   :  { %p741_p3 = scmp.lt.u32.totalorder %s737_s16, %s920_s2 }
  0x26   :  { %p743_p4 = pnand %p741_p3, %p738_p2 }
  0x28   :  { %746 = shalt.err (!%p743_p4)
}
  0x29   :  { %s747_s22 = scalar_lea.vmem %s38_s13, 5120  ;;  %p752_p6 = scmp.lt.s32.totalorder %s38_s13, %s38_s13 }
  0x2a   :  { %p748_p5 = scmp.ne.s32.totalorder %s38_s13, %s747_s22  ;;  %p753_p7 = scmp.lt.s32.totalorder %s747_s22, %s747_s22 }
  0x2c   :  { %p754_p8 = por %p753_p7, %p752_p6 }
  0x2e   :  { %p755_p9 = pnand %p754_p8, %p748_p5 }
  0x30   :  { %758 = shalt.err (!%p755_p9)
}
  0x31   :  { %s790_s0 = smov 64   ;;  %s791_s18 = smov 4  }
  0x32   :  { %43 = dma.hbm_to_vmem [thread:$0]  %s920_s2, 5120, %s38_s13, [#allocation6], %s790_s0, %s790_s0, %s791_s18  }
  0x33   :  { %781 = dma.done.wait [#allocation3], 128  }
  0x34   :  { %782 = vsyncadd [#allocation3], 4294967168 }
  0x35   :  { %783 = dma.done.wait [#allocation6], 5248  }
  0x36   :  { %784 = vsyncadd [#allocation6], 4294962048  ;;  %v792_v0 = vmov 0.0   ;;  %vm793_vm0 = vmmov 0   ;;  %v667_v1 = vld [vmem:[#allocation7] sm:$0xff]   ;;  %v56_v2 = vld [vmem:[#allocation2] sm:$0xff] }
  0x37   :  { %582 = vmatprep.subr.bf16.mxu0 %v792_v0  ;;  %584 = vmatprep.mubr.msk.bf16.mxu0 %vm793_vm0, %v792_v0  ;;  %v57_v3 = vpack.c.bf16 %v56_v2, %v56_v2  ;;  %vm71_vm1 = vcmask 130048   ;;  %v668_v4 = vld [vmem:[#allocation7 + $0x40] sm:$0xff]   ;;  %v669_v5 = vld [vmem:[#allocation7 + $0x48] sm:$0xff]   ;;  %v670_v6 = vld [vmem:[#allocation7 + $0x50] sm:$0xff]   ;;  %s794_s6 = smov [#allocation8]  }
  0x38   :  { %588 = vmatprep.subr.bf16.mxu1 %v792_v0  ;;  %604 = vmatprep.mubr.msk.bf16.mxu1 %vm793_vm0, %v792_v0  ;;  %v671_v7 = vld [vmem:[#allocation7 + $0x58] sm:$0xff]   ;;  %v672_v8 = vld [vmem:[#allocation7 + $0x60] sm:$0xff]   ;;  %v673_v9 = vld [vmem:[#allocation7 + $0x68] sm:$0xff]   ;;  %s509_s7 = sshll.u32 %s794_s6, 4  ;;  %s510_s7 = int_to_ptr.vmem [resolvable:$true] %s509_s7 }
  0x39   :  { %583 = vmatpush3.bf16.msra.mxu0 %v667_v1  ;;  %589 = vmatpush3.bf16.msra.mxu1 %v668_v4  ;;  %v674_v10 = vld [vmem:[#allocation7 + $0x70] sm:$0xff]   ;;  %v675_v11 = vld [vmem:[#allocation7 + $0x78] sm:$0xff]   ;;  %v676_v12 = vld [vmem:[#allocation7 + $0x80] sm:$0xff]   ;;  %s759_s8 = scalar_lea.vmem %s510_s7, 128  ;;  %p764_p11 = scmp.lt.s32.totalorder %s510_s7, %s510_s7 }
  0x3a   :  { %608 = vmatprep.subr.bf16.mxu0 %v792_v0  ;;  %590 = vmatprep.subr.bf16.mxu1 %v792_v0  ;;  %v677_v13 = vld [vmem:[#allocation7 + $0x88] sm:$0xff]   ;;  %v678_v14 = vld [vmem:[#allocation7 + $0x90] sm:$0xff]   ;;  %v679_v15 = vld [vmem:[#allocation7 + $0x98] sm:$0xff]   ;;  %p760_p10 = scmp.ne.s32.totalorder %s510_s7, %s759_s8  ;;  %p765_p12 = scmp.lt.s32.totalorder %s759_s8, %s759_s8 }
  0x3b   :  { %v680_v16 = vld [vmem:[#allocation7 + $0xa0] sm:$0xff]   ;;  %v681_v17 = vld [vmem:[#allocation7 + $0xa8] sm:$0xff]   ;;  %v682_v18 = vld [vmem:[#allocation7 + $0xb0] sm:$0xff]  }
  0x3c   :  { %585 = vmatmul.mubr.msk.bf16.vlgmr.msra.gmra.mrb[0].mxu0 %vm71_vm1, %v57_v3  ;;  %v519_v19 = vld [vmem:[%s921_s3] ss:$0 sm:$0xff]  ;;  %v683_v27 = vld [vmem:[#allocation7 + $0xb8] sm:$0xff]   ;;  %v685_v28 = vld [vmem:[#allocation7 + $0x100] sm:$0xff]   ;;  %p766_p13 = por %p765_p12, %p764_p11 }
  0x3d   :  { %624 = vmatprep.mubr.msk.bf16.mxu0 %vm793_vm0, %v792_v0  ;;  %591 = vmatpush3.bf16.msra.mxu1 %v669_v5  ;;  %v686_v29 = vld [vmem:[#allocation7 + $0x108] sm:$0xff]   ;;  %v687_v30 = vld [vmem:[#allocation7 + $0x110] sm:$0xff]   ;;  %v688_v31 = vld [vmem:[#allocation7 + $0x118] sm:$0xff]  }
  0x3e   :  { %592 = vmatprep.subr.bf16.mxu1 %v792_v0  ;;  %609 = vmatpush3.bf16.msra.mxu0 %v676_v12  ;;  %v689_v32 = vld [vmem:[#allocation7 + $0x120] sm:$0xff]   ;;  %v690_v33 = vld [vmem:[#allocation7 + $0x128] sm:$0xff]   ;;  %v522_v34 = vld [vmem:[%s921_s3 + $0x1] ss:$0 sm:$0xff]  ;;  %p767_p0 = pnand %p766_p13, %p760_p10 }
  0x3f   :  { %610 = vmatprep.subr.bf16.mxu0 %v792_v0  ;;  %v684_v41 = vld [vmem:[#allocation7 + $0xc0] sm:$0xff]   ;;  %v337_v43 = vld [vmem:[#allocation5] sm:$0xff]  ;;  %v691_v45 = vld [vmem:[#allocation7 + $0x130] sm:$0xff]  }
  0x40   :  { %v338_v44 = vpack.c.bf16 %v337_v43, %v337_v43  ;;  %v692_v46 = vld [vmem:[#allocation7 + $0x138] sm:$0xff]   ;;  %v531_v47 = vld [vmem:[%s921_s3 + $0x2] ss:$0 sm:$0xff]  ;;  %v542_v55 = vld [vmem:[%s921_s3 + $0x3] ss:$0 sm:$0xff] }
  0x41   :  { %593 = vmatpush3.bf16.msra.mxu1 %v670_v6 }
  0x42   :  { %594 = vmatprep.subr.bf16.mxu1 %v792_v0  ;;  %611 = vmatpush3.bf16.msra.mxu0 %v677_v13 }
  0x43   :  { %612 = vmatprep.subr.bf16.mxu0 %v792_v0 }
  0x45   :  { %595 = vmatpush3.bf16.msra.mxu1 %v671_v7 }
  0x46   :  { %596 = vmatprep.subr.bf16.mxu1 %v792_v0  ;;  %613 = vmatpush3.bf16.msra.mxu0 %v678_v14 }
  0x47   :  { %614 = vmatprep.subr.bf16.mxu0 %v792_v0 }
  0x49   :  { %597 = vmatpush3.bf16.msra.mxu1 %v672_v8 }
  0x4a   :  { %598 = vmatprep.subr.bf16.mxu1 %v792_v0  ;;  %615 = vmatpush3.bf16.msra.mxu0 %v679_v15 }
  0x4b   :  { %616 = vmatprep.subr.bf16.mxu0 %v792_v0 }
  0x4d   :  { %599 = vmatpush3.bf16.msra.mxu1 %v673_v9 }
  0x4e   :  { %600 = vmatprep.subr.bf16.mxu1 %v792_v0  ;;  %617 = vmatpush3.bf16.msra.mxu0 %v680_v16 }
  0x4f   :  { %618 = vmatprep.subr.bf16.mxu0 %v792_v0 }
  0x51   :  { %601 = vmatpush3.bf16.msra.mxu1 %v674_v10 }
  0x52   :  { %602 = vmatprep.subr.bf16.mxu1 %v792_v0  ;;  %619 = vmatpush3.bf16.msra.mxu0 %v681_v17 }
  0x53   :  { %620 = vmatprep.subr.bf16.mxu0 %v792_v0 }
  0x55   :  { %603 = vmatpush3.bf16.msra.mxu1 %v675_v11 }
  0x56   :  { %634 = vmatprep.subr.bf16.mxu1 %v792_v0  ;;  %621 = vmatpush3.bf16.msra.mxu0 %v682_v18 }
  0x57   :  { %622 = vmatprep.subr.bf16.mxu0 %v792_v0 }
  0x5a   :  { %623 = vmatpush3.bf16.msra.mxu0 %v683_v27 }
  0x5b   :  { %628 = vmatprep.subr.bf16.mxu0 %v792_v0 }
 0x10f   :  { %v109_v20 = vpop.f32.mrb[0].mxu0 }
 0x110   :  { %v110_v21 = vadd.f32 %v519_v19, %v109_v20  ;;  %v586_v22 = vpop.f32.mrb[1].mxu0 }
 0x111   :  { %v112_v23 = vpop.f32.mrb[2].mxu0 }
 0x112   :  { %v115_v24 = vmax.f32 %v110_v21, 0.0  ;;  %v587_v25 = vpop.f32.mrb[3].mxu0 }
 0x114   :  { %v116_v26 = vpack.c.bf16 %v115_v24, %v115_v24 }
 0x116   :  { %605 = vmatmul.mubr.bf16.vlgmr.msra.gmra.mrb[0].mxu1 %v116_v26 }
 0x117   :  { %650 = vmatprep.mubr.msk.bf16.mxu1 %vm793_vm0, %v792_v0  ;;  %635 = vmatpush3.bf16.msra.mxu1 %v685_v28 }
 0x118   :  { %636 = vmatprep.subr.bf16.mxu1 %v792_v0 }
 0x11b   :  { %637 = vmatpush3.bf16.msra.mxu1 %v686_v29 }
 0x11c   :  { %638 = vmatprep.subr.bf16.mxu1 %v792_v0 }
 0x11f   :  { %639 = vmatpush3.bf16.msra.mxu1 %v687_v30 }
 0x120   :  { %640 = vmatprep.subr.bf16.mxu1 %v792_v0 }
 0x123   :  { %641 = vmatpush3.bf16.msra.mxu1 %v688_v31 }
 0x124   :  { %642 = vmatprep.subr.bf16.mxu1 %v792_v0 }
 0x127   :  { %643 = vmatpush3.bf16.msra.mxu1 %v689_v32 }
 0x128   :  { %644 = vmatprep.subr.bf16.mxu1 %v792_v0 }
 0x12b   :  { %645 = vmatpush3.bf16.msra.mxu1 %v690_v33 }
 0x12c   :  { %646 = vmatprep.subr.bf16.mxu1 %v792_v0 }
 0x12f   :  { %647 = vmatpush3.bf16.msra.mxu1 %v691_v45 }
 0x130   :  { %648 = vmatprep.subr.bf16.mxu1 %v792_v0 }
 0x133   :  { %649 = vmatpush3.bf16.msra.mxu1 %v692_v46 }
 0x1e9   :  { %v220_v35 = vpop.f32.mrb[0].mxu1 }
 0x1ea   :  { %v221_v36 = vadd.f32 %v522_v34, %v220_v35  ;;  %v606_v37 = vpop.f32.mrb[1].mxu1 }
 0x1eb   :  { %v223_v38 = vpop.f32.mrb[2].mxu1 }
 0x1ec   :  { %v226_v39 = vmax.f32 %v221_v36, 0.0  ;;  %v607_v40 = vpop.f32.mrb[3].mxu1 }
 0x1ee   :  { %v227_v42 = vpack.c.bf16 %v226_v39, %v226_v39 }
 0x1f0   :  { %625 = vmatmul.mubr.bf16.vlgmr.msra.gmra.mrb[4].mxu0 %v227_v42 }
 0x1f1   :  { %629 = vmatpush3.bf16.msra.mxu0 %v684_v41  ;;  %630 = vmatprep.mubr.msk.bf16.mxu0 %vm793_vm0, %v792_v0 }
 0x1fc   :  { %631 = vmatmul.mubr.msk.bf16.vlgmr.msra.gmra.mrb[4].mxu0 %vm71_vm1, %v338_v44 }
 0x2cf   :  { %v384_v48 = vpop.f32.mrb[4].mxu0 }
 0x2d0   :  { %v654_v49 = vadd.f32 %v531_v47, %v384_v48  ;;  %v632_v50 = vpop.f32.mrb[5].mxu0 }
 0x2d1   :  { %v387_v51 = vpop.f32.mrb[6].mxu0 }
 0x2d2   :  { %v391_v52 = vmax.f32 %v654_v49, 0.0  ;;  %v633_v53 = vpop.f32.mrb[7].mxu0 }
 0x2d4   :  { %v392_v54 = vpack.c.bf16 %v391_v52, %v391_v52 }
 0x2d6   :  { %651 = vmatmul.mubr.bf16.vlgmr.msra.gmra.mrb[4].mxu1 %v392_v54 }
 0x3a9   :  { %v496_v56 = vpop.f32.mrb[4].mxu1 }
 0x3aa   :  { %v497_v57 = vadd.f32 %v542_v55, %v496_v56  ;;  %v652_v58 = vpop.f32.mrb[5].mxu1 }
 0x3ab   :  { %v499_v59 = vpop.f32.mrb[6].mxu1 }
 0x3ac   :  { %502 = vst [vmem:[#allocation8] sm:$0xff] %v497_v57  ;;  %v653_v60 = vpop.f32.mrb[7].mxu1 }
 0x3ad   :  { %770 = shalt.err (!%p767_p0)
}
 0x3ae   :  { %s771_s3 = scalar_lea.hbm %s922_s4, 128 }
 0x3af   :  { %p772_p1 = scmp.ne.s32.totalorder %s922_s4, %s771_s3  ;;  %p775_p2 = scmp.lt.u32.totalorder %s771_s3, %s922_s4 }
 0x3b1   :  { %p777_p3 = pnand %p775_p2, %p772_p1 }
 0x3b3   :  { %780 = shalt.err (!%p777_p3)
}
 0x3b4   :  { %512 = dma.vmem_to_hbm [thread:$0]  %s510_s7, 128, %s922_s4, [#allocation4]  }
 0x3b5   :  { %785 = dma.done.wait [#allocation4], 128  }
 0x3b6   :  { %786 = vsyncadd [#allocation4], 4294967168 }
 0x3b7   :  { %516 = vsyncpa [#allocation3], 1 }
 0x3b8   :  { %517 = vsyncpa [#allocation6], 1 }
 0x3b9   :  { %518 = vsyncpa [#allocation4], 1 }

</bundles_post_ra>
